<compile_context>
chip_gen: v6e
topology: v6e:2x2x1
jax: 0.10.0
libtpu: 0.0.40
codegen_flags: <defaults>
</compile_context>

<pallas_src>
import functools

import jax
import jax.numpy as jnp
from jax.experimental import pallas as pl
from jax.experimental.pallas import tpu as pltpu


def _round_up(x, m):
    return (x + m - 1) // m * m


def graphsage_kernel(adj_ref, feats_ref, self_ref,
                     w_self_t_ref, w_neigh_t_ref, w_cls_t_ref,
                     out_ref, neigh_acc):
    k = pl.program_id(1)

    @pl.when(k == 0)
    def _():
        neigh_acc[...] = jnp.zeros_like(neigh_acc)

    # Streamed mean aggregation: accumulate (TB, TN) @ (TN, F_pad) in f32 scratch.
    neigh_acc[...] += jnp.dot(adj_ref[...], feats_ref[...],
                              preferred_element_type=jnp.float32)

    @pl.when(k == pl.num_programs(1) - 1)
    def _():
        neigh = neigh_acc[...].astype(jnp.bfloat16)
        # Encoder: relu(W_enc @ [self; neigh].T).T == relu(self @ W_self.T + neigh @ W_neigh.T)
        hidden = (jnp.dot(self_ref[...], w_self_t_ref[...],
                          preferred_element_type=jnp.float32) +
                  jnp.dot(neigh, w_neigh_t_ref[...],
                          preferred_element_type=jnp.float32))
        hidden = jnp.maximum(hidden, 0.0).astype(jnp.bfloat16)      # (TB, E_pad)
        # Classifier: (weight @ embeds).T == hidden @ weight.T
        out_ref[...] = jnp.dot(hidden, w_cls_t_ref[...],
                               preferred_element_type=jnp.float32)  # (TB, C_pad)


def prepare_params(w_enc, w_cls, feat_dim):
    """One-time parameter prep (hoisted out of the per-call path):
    split torch's cat([self, neigh], dim=1) encoder weight, transpose, zero-pad the
    lane dims up to 128, and cast to bf16."""
    embed_dim = w_enc.shape[0]
    num_classes = w_cls.shape[0]
    F_pad = _round_up(feat_dim, 128)
    E_pad = _round_up(embed_dim, 128)
    C_pad = _round_up(num_classes, 128)

    w_self_t = jnp.zeros((F_pad, E_pad), jnp.bfloat16).at[:feat_dim, :embed_dim].set(
        w_enc[:, :feat_dim].T.astype(jnp.bfloat16))
    w_neigh_t = jnp.zeros((F_pad, E_pad), jnp.bfloat16).at[:feat_dim, :embed_dim].set(
        w_enc[:, feat_dim:].T.astype(jnp.bfloat16))
    w_cls_t = jnp.zeros((E_pad, C_pad), jnp.bfloat16).at[:embed_dim, :num_classes].set(
        w_cls.T.astype(jnp.bfloat16))
    return w_self_t, w_neigh_t, w_cls_t


@functools.partial(jax.jit, static_argnames=("num_classes",))
def supervised_graphsage_forward(adj, features, self_feats,
                                 w_self_t, w_neigh_t, w_cls_t, *, num_classes):
    """adj: (B, N) row-normalized (mean agg); features: (N, F); self_feats: (B, F);
    w_*_t: pre-padded/transposed bf16 params from prepare_params().
    Returns (B, num_classes) == torch `scores.t()`."""
    B, N = adj.shape
    F = features.shape[1]
    F_pad, E_pad = w_self_t.shape
    C_pad = w_cls_t.shape[1]

    # Tile sizes: full 128-row MXU height on the batch axis; stream the neighbor
    # axis in the largest 128-multiple tile that divides the padded extent.
    # Live buffers stay << 48 MiB, safe on v7x's 64 MiB VMEM as well as v5e/v6e.
    TB = 128
    B_pad = _round_up(B, TB)
    N_pad = _round_up(N, 128)
    TN = next(t for t in (512, 256, 128) if N_pad % t == 0)

    # zero-pad + bf16 cast of the streamed operands (padded regions contribute zero).
    adj_p = jnp.zeros((B_pad, N_pad), jnp.bfloat16).at[:B, :N].set(
        adj.astype(jnp.bfloat16))
    feats_p = jnp.zeros((N_pad, F_pad), jnp.bfloat16).at[:N, :F].set(
        features.astype(jnp.bfloat16))
    self_p = jnp.zeros((B_pad, F_pad), jnp.bfloat16).at[:B, :F].set(
        self_feats.astype(jnp.bfloat16))

    grid = (B_pad // TB, N_pad // TN)

    out_p = pl.pallas_call(
        graphsage_kernel,
        out_shape=jax.ShapeDtypeStruct((B_pad, C_pad), jnp.float32),
        grid_spec=pltpu.PrefetchScalarGridSpec(
            num_scalar_prefetch=0,
            grid=grid,
            in_specs=[
                pl.BlockSpec((TB, TN), lambda i, k: (i, k)),        # adj (streamed over N)
                pl.BlockSpec((TN, F_pad), lambda i, k: (k, 0)),     # features (streamed over N)
                pl.BlockSpec((TB, F_pad), lambda i, k: (i, 0)),     # self feats
                pl.BlockSpec((F_pad, E_pad), lambda i, k: (0, 0)),  # W_self^T
                pl.BlockSpec((F_pad, E_pad), lambda i, k: (0, 0)),  # W_neigh^T
                pl.BlockSpec((E_pad, C_pad), lambda i, k: (0, 0)),  # W_cls^T
            ],
            out_specs=pl.BlockSpec((TB, C_pad), lambda i, k: (i, 0)),
            scratch_shapes=[pltpu.VMEM((TB, F_pad), jnp.float32)],  # neigh accumulator
        ),
        compiler_params=pltpu.CompilerParams(
            dimension_semantics=("parallel", "arbitrary"),
            vmem_limit_bytes=48 << 20,
        ),
    )(adj_p, feats_p, self_p, w_self_t, w_neigh_t, w_cls_t)

    return out_p[:B, :num_classes]


def xavier_uniform(key, shape):
    fan_out, fan_in = shape
    bound = jnp.sqrt(6.0 / (fan_in + fan_out))
    return jax.random.uniform(key, shape, jnp.float32, -bound, bound)


if __name__ == "__main__":
    key = jax.random.PRNGKey(0)
    k_feat, k_adj, k_enc, k_cls = jax.random.split(key, 4)

    # small shapes consistent with the module (grid = (1 batch tile, 5 neighbor tiles))
    N_TOTAL = 600     # nodes in the graph
    FEAT = 32         # raw feature dim
    EMBED = 32        # enc.embed_dim
    NUM_CLASSES = 8
    BATCH = 48        # len(nodes)

    features = jax.random.normal(k_feat, (N_TOTAL, FEAT), jnp.float32)

    # deterministic batch of node ids and a random neighbor structure
    nodes = jnp.arange(BATCH, dtype=jnp.int32)
    adj_raw = (jax.random.uniform(k_adj, (BATCH, N_TOTAL)) < 0.05).astype(jnp.float32)
    adj_raw = adj_raw.at[:, 0].set(1.0)                       # guarantee >=1 neighbor/row
    deg = jnp.maximum(jnp.sum(adj_raw, axis=1, keepdims=True), 1.0)
    adj = adj_raw / deg                                        # mean aggregator

    self_feats = features[nodes]                               # (B, FEAT) gather (glue)

    # parameters (deterministic xavier init, as in the torch __init__)
    w_enc = xavier_uniform(k_enc, (EMBED, 2 * FEAT))           # Encoder.weight
    w_cls = xavier_uniform(k_cls, (NUM_CLASSES, EMBED))        # SupervisedGraphSage.weight

    w_self_t, w_neigh_t, w_cls_t = prepare_params(w_enc, w_cls, FEAT)

    out = supervised_graphsage_forward(adj, features, self_feats,
                                       w_self_t, w_neigh_t, w_cls_t,
                                       num_classes=NUM_CLASSES)
    out = jax.block_until_ready(out)

    # reference in plain JAX, mimicking the kernel's bf16 operands / f32 accumulation
    bf = lambda x: x.astype(jnp.bfloat16).astype(jnp.float32)
    neigh = bf(adj) @ bf(features)
    hidden = jnp.maximum(
        bf(self_feats) @ bf(w_enc[:, :FEAT].T) + bf(neigh) @ bf(w_enc[:, FEAT:].T), 0.0)
    ref = bf(hidden) @ bf(w_cls.T)

    assert out.shape == (BATCH, NUM_CLASSES)
    assert jnp.allclose(out, ref, atol=1e-2, rtol=1e-2), \
        float(jnp.max(jnp.abs(out - ref)))

    print("KERNEL_OK")
</pallas_src>

<mosaic_0001>
module attributes {stable_mosaic.version = 11 : i64} {
  func.func @graphsage_kernel(%arg0: i32, %arg1: i32, %arg2: memref<128x128xbf16, #tpu.memory_space<vmem>>, %arg3: memref<128x128xbf16, #tpu.memory_space<vmem>>, %arg4: memref<128x128xbf16, #tpu.memory_space<vmem>>, %arg5: memref<128x128xbf16, #tpu.memory_space<vmem>>, %arg6: memref<128x128xbf16, #tpu.memory_space<vmem>>, %arg7: memref<128x128xbf16, #tpu.memory_space<vmem>>, %arg8: memref<128x128xf32, #tpu.memory_space<vmem>>, %arg9: memref<128x128xf32, #tpu.memory_space<vmem>>) attributes {dimension_semantics = [#tpu.dimension_semantics<parallel>, #tpu.dimension_semantics<arbitrary>], iteration_bounds = array<i64: 1, 5>, scalar_prefetch = 0 : i64, scratch_operands = 1 : i64, tpu.core_type = #tpu.core_type<tc>, window_params = [{transform_indices = @transform_0, window_bounds = array<i64: 128, 128>}, {transform_indices = @transform_1, window_bounds = array<i64: 128, 128>}, {transform_indices = @transform_2, window_bounds = array<i64: 128, 128>}, {pipeline_mode = #tpu.pipeline_mode<synchronous>, transform_indices = @transform_3, window_bounds = array<i64: 128, 128>}, {pipeline_mode = #tpu.pipeline_mode<synchronous>, transform_indices = @transform_4, window_bounds = array<i64: 128, 128>}, {pipeline_mode = #tpu.pipeline_mode<synchronous>, transform_indices = @transform_5, window_bounds = array<i64: 128, 128>}, {transform_indices = @transform_6, window_bounds = array<i64: 128, 128>}]} {
    %c0_i32 = arith.constant 0 : i32
    %0 = arith.cmpi eq, %arg1, %c0_i32 : i32
    %1 = arith.extui %0 : i1 to i32
    %c0_i32_0 = arith.constant 0 : i32
    %2 = arith.cmpi ne, %1, %c0_i32_0 : i32
    scf.if %2 {
      %cst_9 = arith.constant 0.000000e+00 : f32
      %12 = vector.broadcast %cst_9 : f32 to vector<128x128xf32>
      %c0_10 = arith.constant 0 : index
      %c0_11 = arith.constant 0 : index
      %13 = vector.load %arg9[%c0_10, %c0_11] : memref<128x128xf32, #tpu.memory_space<vmem>>, vector<128x128xf32>
      tpu.vector_store %arg9[%c0_10, %c0_11], %12 {strides = array<i32>} : memref<128x128xf32, #tpu.memory_space<vmem>>, vector<128x128xf32>,
    } else {
    }
    %c0 = arith.constant 0 : index
    %c0_1 = arith.constant 0 : index
    %3 = vector.load %arg9[%c0, %c0_1] : memref<128x128xf32, #tpu.memory_space<vmem>>, vector<128x128xf32>
    %c0_2 = arith.constant 0 : index
    %c0_3 = arith.constant 0 : index
    %4 = vector.load %arg2[%c0_2, %c0_3] : memref<128x128xbf16, #tpu.memory_space<vmem>>, vector<128x128xbf16>
    %c0_4 = arith.constant 0 : index
    %c0_5 = arith.constant 0 : index
    %5 = vector.load %arg3[%c0_4, %c0_5] : memref<128x128xbf16, #tpu.memory_space<vmem>>, vector<128x128xbf16>
    %cst = arith.constant dense<0.000000e+00> : vector<128x128xf32>
    %6 = tpu.matmul %4, %5, %cst {dimension_numbers = #tpu.dot_dimension_numbers<[1], [0], [0], [1], [0, 0, 1, 1], [], []>} : vector<128x128xbf16>, vector<128x128xbf16>, vector<128x128xf32> -> vector<128x128xf32>
    %7 = arith.addf %3, %6 : vector<128x128xf32>
    %c0_6 = arith.constant 0 : index
    %c0_7 = arith.constant 0 : index
    %8 = vector.load %arg9[%c0_6, %c0_7] : memref<128x128xf32, #tpu.memory_space<vmem>>, vector<128x128xf32>
    tpu.vector_store %arg9[%c0_6, %c0_7], %7 {strides = array<i32>} : memref<128x128xf32, #tpu.memory_space<vmem>>, vector<128x128xf32>,
    %c4_i32 = arith.constant 4 : i32
    %9 = arith.cmpi eq, %arg1, %c4_i32 : i32
    %10 = arith.extui %9 : i1 to i32
    %c0_i32_8 = arith.constant 0 : i32
    %11 = arith.cmpi ne, %10, %c0_i32_8 : i32
    scf.if %11 {
      %c0_9 = arith.constant 0 : index
      %c0_10 = arith.constant 0 : index
      %12 = vector.load %arg9[%c0_9, %c0_10] : memref<128x128xf32, #tpu.memory_space<vmem>>, vector<128x128xf32>
      %13 = arith.truncf %12 : vector<128x128xf32> to vector<128x128xbf16>
      %c0_11 = arith.constant 0 : index
      %c0_12 = arith.constant 0 : index
      %14 = vector.load %arg4[%c0_11, %c0_12] : memref<128x128xbf16, #tpu.memory_space<vmem>>, vector<128x128xbf16>
      %c0_13 = arith.constant 0 : index
      %c0_14 = arith.constant 0 : index
      %15 = vector.load %arg5[%c0_13, %c0_14] : memref<128x128xbf16, #tpu.memory_space<vmem>>, vector<128x128xbf16>
      %cst_15 = arith.constant dense<0.000000e+00> : vector<128x128xf32>
      %16 = tpu.matmul %14, %15, %cst_15 {dimension_numbers = #tpu.dot_dimension_numbers<[1], [0], [0], [1], [0, 0, 1, 1], [], []>} : vector<128x128xbf16>, vector<128x128xbf16>, vector<128x128xf32> -> vector<128x128xf32>
      %c0_16 = arith.constant 0 : index
      %c0_17 = arith.constant 0 : index
      %17 = vector.load %arg6[%c0_16, %c0_17] : memref<128x128xbf16, #tpu.memory_space<vmem>>, vector<128x128xbf16>
      %cst_18 = arith.constant dense<0.000000e+00> : vector<128x128xf32>
      %18 = tpu.matmul %13, %17, %cst_18 {dimension_numbers = #tpu.dot_dimension_numbers<[1], [0], [0], [1], [0, 0, 1, 1], [], []>} : vector<128x128xbf16>, vector<128x128xbf16>, vector<128x128xf32> -> vector<128x128xf32>
      %19 = arith.addf %16, %18 : vector<128x128xf32>
      %cst_19 = arith.constant 0.000000e+00 : f32
      %20 = vector.broadcast %cst_19 : f32 to vector<128x128xf32>
      %21 = arith.maximumf %19, %20 : vector<128x128xf32>
      %22 = arith.truncf %21 : vector<128x128xf32> to vector<128x128xbf16>
      %c0_20 = arith.constant 0 : index
      %c0_21 = arith.constant 0 : index
      %23 = vector.load %arg7[%c0_20, %c0_21] : memref<128x128xbf16, #tpu.memory_space<vmem>>, vector<128x128xbf16>
      %cst_22 = arith.constant dense<0.000000e+00> : vector<128x128xf32>
      %24 = tpu.matmul %22, %23, %cst_22 {dimension_numbers = #tpu.dot_dimension_numbers<[1], [0], [0], [1], [0, 0, 1, 1], [], []>} : vector<128x128xbf16>, vector<128x128xbf16>, vector<128x128xf32> -> vector<128x128xf32>
      %c0_23 = arith.constant 0 : index
      %c0_24 = arith.constant 0 : index
      %25 = vector.load %arg8[%c0_23, %c0_24] : memref<128x128xf32, #tpu.memory_space<vmem>>, vector<128x128xf32>
      tpu.vector_store %arg8[%c0_23, %c0_24], %24 {strides = array<i32>} : memref<128x128xf32, #tpu.memory_space<vmem>>, vector<128x128xf32>,
    } else {
    }
    return
  }
  func.func @transform_0(%arg0: i32, %arg1: i32) -> (i32, i32) {
    %c0_i32 = arith.constant 0 : i32
    return %arg0, %arg1 : i32, i32
  }
  func.func @transform_1(%arg0: i32, %arg1: i32) -> (i32, i32) {
    %c0_i32 = arith.constant 0 : i32
    %c0_i32_0 = arith.constant 0 : i32
    return %arg1, %c0_i32 : i32, i32
  }
  func.func @transform_2(%arg0: i32, %arg1: i32) -> (i32, i32) {
    %c0_i32 = arith.constant 0 : i32
    %c0_i32_0 = arith.constant 0 : i32
    return %arg0, %c0_i32 : i32, i32
  }
  func.func @transform_3(%arg0: i32, %arg1: i32) -> (i32, i32) {
    %c0_i32 = arith.constant 0 : i32
    %c0_i32_0 = arith.constant 0 : i32
    %c0_i32_1 = arith.constant 0 : i32
    return %c0_i32, %c0_i32_0 : i32, i32
  }
  func.func @transform_4(%arg0: i32, %arg1: i32) -> (i32, i32) {
    %c0_i32 = arith.constant 0 : i32
    %c0_i32_0 = arith.constant 0 : i32
    %c0_i32_1 = arith.constant 0 : i32
    return %c0_i32, %c0_i32_0 : i32, i32
  }
  func.func @transform_5(%arg0: i32, %arg1: i32) -> (i32, i32) {
    %c0_i32 = arith.constant 0 : i32
    %c0_i32_0 = arith.constant 0 : i32
    %c0_i32_1 = arith.constant 0 : i32
    return %c0_i32, %c0_i32_0 : i32, i32
  }
  func.func @transform_6(%arg0: i32, %arg1: i32) -> (i32, i32) {
    %c0_i32 = arith.constant 0 : i32
    %c0_i32_0 = arith.constant 0 : i32
    return %arg0, %c0_i32 : i32, i32
  }
}

</mosaic_0001>

<bundles_post_ra>
// kernel: supervised_graphsage_forward.1
= control target key start
LH: loop header
LB: loop body
LE: loop exit
PB: predicated region body
PF: predicated region fallthrough
CT: control target
= control target key end

     0   :  { %s1877_s21 = smov 0   ;;  %s1879_s22 = smov 0   ;;  %s2126_s0 = inlined_call_operand.vmem [shape: bf16[128,640], index: 0, kind: input, shape index: {}]   ;;  %s2127_s1 = inlined_call_operand.vmem [shape: bf16[640,128], index: 1, kind: input, shape index: {}]   ;;  %s2128_s2 = inlined_call_operand.vmem [shape: bf16[128,128], index: 2, kind: input, shape index: {}]   ;;  %s2129_s3 = inlined_call_operand.vmem [shape: bf16[128,128], index: 3, kind: input, shape index: {}]   ;;  %s2130_s4 = inlined_call_operand.vmem [shape: bf16[128,128], index: 4, kind: input, shape index: {}]   ;;  %s2131_s5 = inlined_call_operand.vmem [shape: bf16[128,128], index: 5, kind: input, shape index: {}]   ;;  %s2132_s6 = inlined_call_operand.vmem [shape: f32[128,128], index: 6, kind: output, shape index: {}]  }
   0x1   :  { %s1881_s23 = smov 0   ;;  %s1883_s24 = smov 0  }
   0x2   :  { %s1885_s25 = smov 0  }
   0x3 LB: > { %s25_s26 = sadd.s32 1, %s1835_s24  ;;  %p44_p1 = scmp.ne.s32.totalorder %s1827_s22, %s1823_s21  ;;  %s1839_s25 = sphi %s1885_s25, %s16_s25   ;;  %s1835_s24 = sphi %s1883_s24, %s2136_s24   ;;  %s1831_s23 = sphi %s1881_s23, %s2135_s23   ;;  %s1827_s22 = sphi %s1879_s22, %s2134_s22   ;;  %s1823_s21 = sphi %s1877_s21, %s2133_s21  }
   0x4   : > { %p26_p0 = scmp.ge.s32.totalorder %s25_s26, 5  ;;  %p45_p2 = scmp.eq.s32.totalorder %s1839_s25, 0 }
   0x5   : > { %s37_s28 = sadd.s32 1, %s1827_s22  ;;  %p1427_p5 = scmp.ge.s32.totalorder %s1839_s25, 5 }
   0x6   : > { %s2138_s26 = smov (%p26_p0, %s25_s26), 0  ;;  %p46_p3 = por %p45_p2, %p44_p1 }
   0x7   : > { %s33_s27 = ssub.s32 %s1835_s24, %s2138_s26  ;;  %229 = sbr.rel (%p1427_p5) target bundleno = 26 (0x1a), region = 32 }
   0x8   : > { %p35_p4 = scmp.eq.s32.totalorder %s33_s27, 0 }
   0xa   : > { %s1912_s29 = scalar_select %p35_p4, %s1827_s22, %s37_s28  }
   0xc   : > { %232 = sbr.rel (!%p46_p3) target bundleno = 26 (0x1a), region = 36  ;;  %s234_s30 = sand.u32 (%p46_p3), 1, %s1827_s22  }
   0xd   : > { %s1429_s7 = sshll.u32 (%p46_p3), %s1835_s24, 2  ;;  %s1428_s8 = sshll.u32 (%p46_p3), %s234_s30, 6 }
   0xe   : > { %s1920_s11 = scalar_lea.vmem (%p46_p3), %s2126_s0, %s1429_s7  ;;  %s236_s12 = scalar_lea.vmem (%p46_p3), [#allocation3], %s1428_s8 }
   0xf   : > { %v258_v0 = vld [vmem:[%s1920_s11] sm:$0xf] (%p46_p3)  ;;  %v260_v1 = vld [vmem:[%s1920_s11 + $0x14] sm:$0xf] (%p46_p3)  ;;  %v262_v2 = vld [vmem:[%s1920_s11 + $0x28] sm:$0xf] (%p46_p3) }
  0x10   : > { %259 = vst [vmem:[%s236_s12] sm:$0xf] (%p46_p3), %v258_v0  ;;  %261 = vst [vmem:[%s236_s12 + $0x4] sm:$0xf] (%p46_p3), %v260_v1  ;;  %v264_v3 = vld [vmem:[%s1920_s11 + $0x3c] sm:$0xf] (%p46_p3) }
  0x11   : > { %v266_v4 = vld [vmem:[%s1920_s11 + $0x50] sm:$0xf]  ;;  %263 = vst [vmem:[%s236_s12 + $0x8] sm:$0xf] %v262_v2  ;;  %265 = vst [vmem:[%s236_s12 + $0xc] sm:$0xf] %v264_v3 }
  0x12   : > { %267 = vst [vmem:[%s236_s12 + $0x10] sm:$0xf] %v266_v4  ;;  %v268_v5 = vld [vmem:[%s1920_s11 + $0x64] sm:$0xf]  ;;  %v270_v6 = vld [vmem:[%s1920_s11 + $0x78] sm:$0xf] }
  0x13   : > { %v272_v7 = vld [vmem:[%s1920_s11 + $0x8c] sm:$0xf]  ;;  %269 = vst [vmem:[%s236_s12 + $0x14] sm:$0xf] %v268_v5  ;;  %271 = vst [vmem:[%s236_s12 + $0x18] sm:$0xf] %v270_v6 }
  0x14   : > { %273 = vst [vmem:[%s236_s12 + $0x1c] sm:$0xf] %v272_v7  ;;  %v274_v8 = vld [vmem:[%s1920_s11 + $0xa0] sm:$0xf]  ;;  %v276_v9 = vld [vmem:[%s1920_s11 + $0xb4] sm:$0xf] }
  0x15   : > { %v278_v10 = vld [vmem:[%s1920_s11 + $0xc8] sm:$0xf]  ;;  %275 = vst [vmem:[%s236_s12 + $0x20] sm:$0xf] %v274_v8  ;;  %277 = vst [vmem:[%s236_s12 + $0x24] sm:$0xf] %v276_v9 }
  0x16   : > { %279 = vst [vmem:[%s236_s12 + $0x28] sm:$0xf] %v278_v10  ;;  %v280_v11 = vld [vmem:[%s1920_s11 + $0xdc] sm:$0xf]  ;;  %v282_v12 = vld [vmem:[%s1920_s11 + $0xf0] sm:$0xf] }
  0x17   : > { %v284_v13 = vld [vmem:[%s1920_s11 + $0x104] sm:$0xf]  ;;  %281 = vst [vmem:[%s236_s12 + $0x2c] sm:$0xf] %v280_v11  ;;  %283 = vst [vmem:[%s236_s12 + $0x30] sm:$0xf] %v282_v12 }
  0x18   : > { %285 = vst [vmem:[%s236_s12 + $0x34] sm:$0xf] %v284_v13  ;;  %v286_v14 = vld [vmem:[%s1920_s11 + $0x118] sm:$0xf]  ;;  %v288_v15 = vld [vmem:[%s1920_s11 + $0x12c] sm:$0xf] }
  0x19   : > { %287 = vst [vmem:[%s236_s12 + $0x38] sm:$0xf] %v286_v14  ;;  %289 = vst [vmem:[%s236_s12 + $0x3c] sm:$0xf] %v288_v15 }
  0x1a PF: > { %p1430_p6 = scmp.ge.s32.totalorder %s1839_s25, 1  ;;  %p353_p7 = scmp.lt.s32.totalorder %s1839_s25, 6 }
  0x1c   : > { %p354_p8 = pnand %p1430_p6, %p353_p7 }
  0x1d   : > { %s360_s13 = sand.u32 (!%p354_p8), 1, %s1823_s21   ;;  %s1432_s14 = sshll.u32 (!%p354_p8), %s1831_s23, 4 }
  0x1e   : > { %357 = sbr.rel (%p354_p8) target bundleno = 756 (0x2f4), region = 81  ;;  %s1431_s15 = sshll.u32 (!%p354_p8), %s360_s13, 6 }
  0x1f   : > { %p401_p9 = scmp.lt.s32.totalorder (!%p354_p8), %s1432_s14, 79  ;;  %s1947_s20 = scalar_lea.vmem (!%p354_p8), [#allocation3], %s1431_s15 }
  0x20   : > { %p1434_p10 = scmp.ne.s32.totalorder (!%p354_p8), %s1831_s23, 0 }
  0x23   : > { %s2140_s14 = smov (!%p401_p9, %s1432_s14), 79  ;;  %422 = sbr.rel (%p1434_p10) target bundleno = 49 (0x31), region = 89 }
  0x24   : > { %s1433_s16 = sshll.u32 %s2140_s14, 2 }
  0x25   : > { %s1945_s19 = scalar_lea.vmem %s2127_s1, %s1433_s16 }
  0x28   : > { %v1841_v16 = vmov 0.0  }
  0x29   : > { %423 = vst [vmem:[#allocation2 + $0x30] sm:$0xff] %v1841_v16  ;;  %424 = vst [vmem:[#allocation2] sm:$0xff] %v1841_v16 }
  0x2a   : > { %425 = vst [vmem:[#allocation2 + $0x58] sm:$0xff] %v1841_v16  ;;  %426 = vst [vmem:[#allocation2 + $0x18] sm:$0xff] %v1841_v16 }
  0x2b   : > { %427 = vst [vmem:[#allocation2 + $0x50] sm:$0xff] %v1841_v16  ;;  %428 = vst [vmem:[#allocation2 + $0x68] sm:$0xff] %v1841_v16 }
  0x2c   : > { %429 = vst [vmem:[#allocation2 + $0x8] sm:$0xff] %v1841_v16  ;;  %430 = vst [vmem:[#allocation2 + $0x48] sm:$0xff] %v1841_v16 }
  0x2d   : > { %431 = vst [vmem:[#allocation2 + $0x40] sm:$0xff] %v1841_v16  ;;  %432 = vst [vmem:[#allocation2 + $0x20] sm:$0xff] %v1841_v16 }
  0x2e   : > { %433 = vst [vmem:[#allocation2 + $0x10] sm:$0xff] %v1841_v16  ;;  %434 = vst [vmem:[#allocation2 + $0x38] sm:$0xff] %v1841_v16 }
  0x2f   : > { %435 = vst [vmem:[#allocation2 + $0x60] sm:$0xff] %v1841_v16  ;;  %436 = vst [vmem:[#allocation2 + $0x70] sm:$0xff] %v1841_v16 }
  0x30   : > { %437 = vst [vmem:[#allocation2 + $0x78] sm:$0xff] %v1841_v16  ;;  %438 = vst [vmem:[#allocation2 + $0x28] sm:$0xff] %v1841_v16 }
  0x31 PF: > { %v1753_v17 = vld [vmem:[%s1945_s19 + $0x38] sm:$0xff]   ;;  %v1754_v18 = vld [vmem:[%s1945_s19 + $0x30] sm:$0xff]   ;;  %v1755_v19 = vld [vmem:[%s1945_s19 + $0x28] sm:$0xff]   ;;  %p1451_p11 = scmp.ne.s32.totalorder %s1831_s23, 4 }
  0x32   : > { %1552 = vmatprep.subr.bf16.mxu0 %v1753_v17  ;;  %1680 = vmatprep.subr.bf16.mxu1 %v1753_v17  ;;  %v1756_v20 = vld [vmem:[%s1945_s19 + $0x20] sm:$0xff]   ;;  %v1757_v23 = vld [vmem:[%s1945_s19 + $0x18] sm:$0xff]   ;;  %v1758_v24 = vld [vmem:[%s1945_s19 + $0x10] sm:$0xff]  }
  0x33   : > { %1553 = vmatpush3.bf16.msra.mxu0 %v1753_v17  ;;  %1688 = vmatpush3.bf16.msra.mxu1 %v1753_v17  ;;  %v1761_v21 = vld [vmem:[%s1947_s20] sm:$0xff]   ;;  %v1759_v25 = vld [vmem:[%s1945_s19 + $0x8] sm:$0xff]   ;;  %v1765_v29 = vld [vmem:[%s1947_s20 + $0x10] sm:$0xff]  }
  0x34   : > { %1554 = vmatprep.subr.bf16.mxu0 %v1754_v18  ;;  %1681 = vmatprep.subr.bf16.mxu1 %v1754_v18  ;;  %v1762_v22 = vld [vmem:[%s1947_s20 + $0x20] sm:$0xff]   ;;  %v1763_v27 = vld [vmem:[%s1947_s20 + $0x8] sm:$0xff]   ;;  %v1766_v30 = vld [vmem:[%s1947_s20 + $0x30] sm:$0xff]  }
  0x35   : > { %1568 = vmatprep.mubr.bf16.mxu0 %v1761_v21  ;;  %1576 = vmatprep.mubr.bf16.mxu1 %v1762_v22  ;;  %v1760_v26 = vld [vmem:[%s1945_s19] sm:$0xff]   ;;  %v1764_v28 = vld [vmem:[%s1947_s20 + $0x28] sm:$0xff]   ;;  %v1767_v31 = vld [vmem:[%s1947_s20 + $0x18] sm:$0xff]  }
  0x36   : > { %v1768_v32 = vld [vmem:[%s1947_s20 + $0x38] sm:$0xff]   ;;  %v449_v34 = vld [vmem:[#allocation2 + $0x10] sm:$0xff]  ;;  %v447_v38 = vld [vmem:[#allocation2 + $0x40] sm:$0xff] }
  0x37   : > { %1555 = vmatpush3.bf16.msra.mxu0 %v1754_v18  ;;  %1689 = vmatpush3.bf16.msra.mxu1 %v1754_v18  ;;  %v441_v33 = vld [vmem:[#allocation2 + $0x58] sm:$0xff]  ;;  %v439_v37 = vld [vmem:[#allocation2 + $0x30] sm:$0xff]  ;;  %v440_v49 = vld [vmem:[#allocation2] sm:$0xff] }
  0x38   : > { %1556 = vmatprep.subr.bf16.mxu0 %v1755_v19  ;;  %1682 = vmatprep.subr.bf16.mxu1 %v1755_v19  ;;  %v442_v43 = vld [vmem:[#allocation2 + $0x18] sm:$0xff]  ;;  %v448_v50 = vld [vmem:[#allocation2 + $0x20] sm:$0xff]  ;;  %v445_v55 = vld [vmem:[#allocation2 + $0x8] sm:$0xff] }
  0x39   : > { %v450_v44 = vld [vmem:[#allocation2 + $0x38] sm:$0xff]  ;;  %v443_v61 = vld [vmem:[#allocation2 + $0x50] sm:$0xff]  ;;  %v451_v62 = vld [vmem:[#allocation2 + $0x60] sm:$0xff] }
  0x3a   : > { %v453_v56 = vld [vmem:[#allocation2 + $0x78] sm:$0xff]  ;;  %v446_v3 = vld [vmem:[#allocation2 + $0x48] sm:$0xff]  ;;  %v452_v10 = vld [vmem:[#allocation2 + $0x70] sm:$0xff] }
  0x3b   : > { %1557 = vmatpush3.bf16.msra.mxu0 %v1755_v19  ;;  %1690 = vmatpush3.bf16.msra.mxu1 %v1755_v19  ;;  %v454_v4 = vld [vmem:[#allocation2 + $0x28] sm:$0xff] }
  0x3c   : > { %1558 = vmatprep.subr.bf16.mxu0 %v1756_v20  ;;  %1683 = vmatprep.subr.bf16.mxu1 %v1756_v20  ;;  %v444_v9 = vld [vmem:[#allocation2 + $0x68] sm:$0xff] }
  0x3f   : > { %1559 = vmatpush3.bf16.msra.mxu0 %v1756_v20  ;;  %1691 = vmatpush3.bf16.msra.mxu1 %v1756_v20 }
  0x40   : > { %1560 = vmatprep.subr.bf16.mxu0 %v1757_v23  ;;  %1684 = vmatprep.subr.bf16.mxu1 %v1757_v23 }
  0x43   : > { %1561 = vmatpush3.bf16.msra.mxu0 %v1757_v23  ;;  %1692 = vmatpush3.bf16.msra.mxu1 %v1757_v23 }
  0x44   : > { %1562 = vmatprep.subr.bf16.mxu0 %v1758_v24  ;;  %1685 = vmatprep.subr.bf16.mxu1 %v1758_v24 }
  0x47   : > { %1563 = vmatpush3.bf16.msra.mxu0 %v1758_v24  ;;  %1693 = vmatpush3.bf16.msra.mxu1 %v1758_v24 }
  0x48   : > { %1564 = vmatprep.subr.bf16.mxu0 %v1759_v25  ;;  %1686 = vmatprep.subr.bf16.mxu1 %v1759_v25 }
  0x4b   : > { %1565 = vmatpush3.bf16.msra.mxu0 %v1759_v25  ;;  %1694 = vmatpush3.bf16.msra.mxu1 %v1759_v25 }
  0x4c   : > { %1566 = vmatprep.subr.bf16.mxu0 %v1760_v26  ;;  %1687 = vmatprep.subr.bf16.mxu1 %v1760_v26 }
  0x4f   : > { %1567 = vmatpush3.bf16.msra.mxu0 %v1760_v26  ;;  %1695 = vmatpush3.bf16.msra.mxu1 %v1760_v26 }
  0x52   : > { %1569 = vmatmul.mubr.bf16.vlgmr.msra.gmra.mxu0 %v1763_v27  ;;  %1577 = vmatmul.mubr.bf16.vlgmr.msra.gmra.mxu1 %v1764_v28 }
  0x53   : > { %1572 = vmatprep.mubr.bf16.mxu0 %v1765_v29  ;;  %1580 = vmatprep.mubr.bf16.mxu1 %v1766_v30 }
  0x5a   : > { %1573 = vmatmul.mubr.bf16.gmra.mxu0 %v1767_v31  ;;  %1581 = vmatmul.mubr.bf16.gmra.mxu1 %v1768_v32 }
 0x112   : > { %v1570_v35 = vpop.f32.mrf.mxu0  ;;  %v1578_v36 = vpop.f32.mrf.mxu1 }
 0x113   : > { %v682_v39 = vadd.f32 %v1570_v35, %v441_v33  ;;  %v690_v40 = vadd.f32 %v1578_v36, %v449_v34 }
 0x114   : > { %v617_v41 = vpop.f32.mrf.mxu0  ;;  %v649_v42 = vpop.f32.mrf.mxu1 }
 0x115   : > { %698 = vst [vmem:[#allocation2 + $0x58] sm:$0xff] %v682_v39  ;;  %706 = vst [vmem:[#allocation2 + $0x10] sm:$0xff] %v690_v40  ;;  %v680_v45 = vadd.f32 %v617_v41, %v439_v37  ;;  %v688_v46 = vadd.f32 %v649_v42, %v447_v38 }
 0x116   : > { %v1571_v47 = vpop.f32.mrf.mxu0  ;;  %v1579_v48 = vpop.f32.mrf.mxu1 }
 0x117   : > { %696 = vst [vmem:[#allocation2 + $0x30] sm:$0xff] %v680_v45  ;;  %704 = vst [vmem:[#allocation2 + $0x40] sm:$0xff] %v688_v46  ;;  %v683_v51 = vadd.f32 %v1571_v47, %v442_v43  ;;  %v691_v52 = vadd.f32 %v1579_v48, %v450_v44 }
 0x118   : > { %v620_v53 = vpop.f32.mrf.mxu0  ;;  %v652_v54 = vpop.f32.mrf.mxu1 }
 0x119   : > { %699 = vst [vmem:[#allocation2 + $0x18] sm:$0xff] %v683_v51  ;;  %707 = vst [vmem:[#allocation2 + $0x38] sm:$0xff] %v691_v52  ;;  %v681_v57 = vadd.f32 %v620_v53, %v440_v49  ;;  %v689_v58 = vadd.f32 %v652_v54, %v448_v50 }
 0x11a   : > { %v1574_v59 = vpop.f32.mrf.mxu0  ;;  %v1582_v60 = vpop.f32.mrf.mxu1 }
 0x11b   : > { %697 = vst [vmem:[#allocation2] sm:$0xff] %v681_v57  ;;  %705 = vst [vmem:[#allocation2 + $0x20] sm:$0xff] %v689_v58  ;;  %v686_v63 = vadd.f32 %v1574_v59, %v445_v55  ;;  %v694_v0 = vadd.f32 %v1582_v60, %v453_v56 }
 0x11c   : > { %v633_v1 = vpop.f32.mrf.mxu0  ;;  %v665_v2 = vpop.f32.mrf.mxu1 }
 0x11d   : > { %702 = vst [vmem:[#allocation2 + $0x8] sm:$0xff] %v686_v63  ;;  %710 = vst [vmem:[#allocation2 + $0x78] sm:$0xff] %v694_v0  ;;  %v684_v5 = vadd.f32 %v633_v1, %v443_v61  ;;  %v692_v6 = vadd.f32 %v665_v2, %v451_v62 }
 0x11e   : > { %v1575_v7 = vpop.f32.mrf.mxu0  ;;  %v1583_v8 = vpop.f32.mrf.mxu1 }
 0x11f   : > { %700 = vst [vmem:[#allocation2 + $0x50] sm:$0xff] %v684_v5  ;;  %708 = vst [vmem:[#allocation2 + $0x60] sm:$0xff] %v692_v6  ;;  %v687_v11 = vadd.f32 %v1575_v7, %v446_v3  ;;  %v695_v12 = vadd.f32 %v1583_v8, %v454_v4  ;;  %715 = sbr.rel (%p1451_p11) target bundleno = 756 (0x2f4), region = 93 }
 0x120   : > { %v636_v13 = vpop.f32.mrf.mxu0  ;;  %v668_v14 = vpop.f32.mrf.mxu1 }
 0x121   : > { %703 = vst [vmem:[#allocation2 + $0x48] sm:$0xff] %v687_v11  ;;  %711 = vst [vmem:[#allocation2 + $0x28] sm:$0xff] %v695_v12  ;;  %v685_v15 = vadd.f32 %v636_v13, %v444_v9  ;;  %v693_v16 = vadd.f32 %v668_v14, %v452_v10 }
 0x123   : > { %701 = vst [vmem:[#allocation2 + $0x68] sm:$0xff] %v685_v15  ;;  %709 = vst [vmem:[#allocation2 + $0x70] sm:$0xff] %v693_v16 }
 0x124   : > { %v1769_v17 = vld [vmem:[%s2130_s4 + $0x38] sm:$0xff]   ;;  %v1771_v19 = vld [vmem:[%s2130_s4 + $0x30] sm:$0xff]   ;;  %v1773_v21 = vld [vmem:[%s2130_s4 + $0x28] sm:$0xff]  }
 0x125   : > { %v1770_v18 = vld [vmem:[%s2129_s3 + $0x38] sm:$0xff]   ;;  %1584 = vmatprep.subr.bf16.mxu0 %v1769_v17  ;;  %v1772_v20 = vld [vmem:[%s2129_s3 + $0x30] sm:$0xff]   ;;  %v1774_v22 = vld [vmem:[%s2129_s3 + $0x28] sm:$0xff]  }
 0x126   : > { %1616 = vmatprep.subr.bf16.mxu1 %v1770_v18  ;;  %1585 = vmatpush3.bf16.msra.mxu0 %v1769_v17  ;;  %v1775_v23 = vld [vmem:[%s2130_s4 + $0x20] sm:$0xff]   ;;  %v1777_v25 = vld [vmem:[%s2130_s4 + $0x18] sm:$0xff]   ;;  %v1779_v27 = vld [vmem:[%s2130_s4 + $0x10] sm:$0xff]  }
 0x127   : > { %1617 = vmatpush3.bf16.msra.mxu1 %v1770_v18  ;;  %1586 = vmatprep.subr.bf16.mxu0 %v1771_v19  ;;  %v1776_v24 = vld [vmem:[%s2129_s3 + $0x20] sm:$0xff]   ;;  %v1778_v26 = vld [vmem:[%s2129_s3 + $0x18] sm:$0xff]   ;;  %v716_v28 = vld [vmem:[#allocation2 + $0x30] sm:$0xff] }
 0x128   : > { %1618 = vmatprep.subr.bf16.mxu1 %v1772_v20  ;;  %v717_v29 = vld [vmem:[#allocation2] sm:$0xff]  ;;  %v1780_v30 = vld [vmem:[%s2129_s3 + $0x10] sm:$0xff]   ;;  %v1781_v33 = vld [vmem:[%s2130_s4 + $0x8] sm:$0xff]  }
 0x129   : > { %v732_v31 = vpack.c.bf16 %v717_v29, %v716_v28  ;;  %v1785_v32 = vld [vmem:[%s2128_s2] sm:$0xff]   ;;  %v1782_v34 = vld [vmem:[%s2129_s3 + $0x8] sm:$0xff]   ;;  %v718_v37 = vld [vmem:[#allocation2 + $0x58] sm:$0xff] }
 0x12a   : > { %1587 = vmatpush3.bf16.msra.mxu0 %v1771_v19  ;;  %1632 = vmatprep.mubr.bf16.mxu1 %v1785_v32  ;;  %v1783_v35 = vld [vmem:[%s2130_s4] sm:$0xff]   ;;  %v719_v38 = vld [vmem:[#allocation2 + $0x18] sm:$0xff]  ;;  %v720_v39 = vld [vmem:[#allocation2 + $0x50] sm:$0xff] }
 0x12b   : > { %1619 = vmatpush3.bf16.msra.mxu1 %v1772_v20  ;;  %1588 = vmatprep.subr.bf16.mxu0 %v1773_v21  ;;  %v1784_v36 = vld [vmem:[%s2129_s3] sm:$0xff]   ;;  %v721_v40 = vld [vmem:[#allocation2 + $0x68] sm:$0xff]  ;;  %v733_v41 = vpack.c.bf16 %v719_v38, %v718_v37  ;;  %v1793_v42 = vld [vmem:[%s2131_s5 + $0x38] sm:$0xff]  }
 0x12c   : > { %1620 = vmatprep.subr.bf16.mxu1 %v1774_v22  ;;  %1600 = vmatprep.mubr.bf16.mxu0 %v732_v31  ;;  %v1786_v43 = vld [vmem:[%s2128_s2 + $0x8] sm:$0xff]   ;;  %v734_v44 = vpack.c.bf16 %v721_v40, %v720_v39  ;;  %v1787_v45 = vld [vmem:[%s2128_s2 + $0x10] sm:$0xff]   ;;  %v724_v49 = vld [vmem:[#allocation2 + $0x40] sm:$0xff] }
 0x12d   : > { %v722_v46 = vld [vmem:[#allocation2 + $0x8] sm:$0xff]  ;;  %v1794_v47 = vld [vmem:[%s2131_s5 + $0x30] sm:$0xff]   ;;  %v725_v50 = vld [vmem:[#allocation2 + $0x20] sm:$0xff] }
 0x12e   : > { %1589 = vmatpush3.bf16.msra.mxu0 %v1773_v21  ;;  %v723_v48 = vld [vmem:[#allocation2 + $0x48] sm:$0xff]  ;;  %v1788_v53 = vld [vmem:[%s2128_s2 + $0x18] sm:$0xff]   ;;  %v736_v54 = vpack.c.bf16 %v725_v50, %v724_v49  ;;  %v1789_v55 = vld [vmem:[%s2128_s2 + $0x20] sm:$0xff]  }
 0x12f   : > { %1621 = vmatpush3.bf16.msra.mxu1 %v1774_v22  ;;  %1590 = vmatprep.subr.bf16.mxu0 %v1775_v23  ;;  %v1795_v51 = vld [vmem:[%s2131_s5 + $0x28] sm:$0xff]   ;;  %v735_v52 = vpack.c.bf16 %v723_v48, %v722_v46  ;;  %v1796_v56 = vld [vmem:[%s2131_s5 + $0x20] sm:$0xff]   ;;  %v726_v57 = vld [vmem:[#allocation2 + $0x10] sm:$0xff] }
 0x130   : > { %1622 = vmatprep.subr.bf16.mxu1 %v1776_v24  ;;  %v727_v58 = vld [vmem:[#allocation2 + $0x38] sm:$0xff]  ;;  %v728_v59 = vld [vmem:[#allocation2 + $0x60] sm:$0xff]  ;;  %v729_v60 = vld [vmem:[#allocation2 + $0x70] sm:$0xff] }
 0x131   : > { %v1797_v61 = vld [vmem:[%s2131_s5 + $0x18] sm:$0xff]   ;;  %v737_v62 = vpack.c.bf16 %v727_v58, %v726_v57  ;;  %v1790_v63 = vld [vmem:[%s2128_s2 + $0x28] sm:$0xff]   ;;  %v738_v0 = vpack.c.bf16 %v729_v60, %v728_v59  ;;  %v1791_v1 = vld [vmem:[%s2128_s2 + $0x30] sm:$0xff]  }
 0x132   : > { %1591 = vmatpush3.bf16.msra.mxu0 %v1775_v23  ;;  %v730_v2 = vld [vmem:[#allocation2 + $0x78] sm:$0xff]  ;;  %v731_v3 = vld [vmem:[#allocation2 + $0x28] sm:$0xff]  ;;  %v1798_v6 = vld [vmem:[%s2131_s5 + $0x10] sm:$0xff]  }
 0x133   : > { %1623 = vmatpush3.bf16.msra.mxu1 %v1776_v24  ;;  %1592 = vmatprep.subr.bf16.mxu0 %v1777_v25  ;;  %v739_v4 = vpack.c.bf16 %v731_v3, %v730_v2  ;;  %v1792_v5 = vld [vmem:[%s2128_s2 + $0x38] sm:$0xff]   ;;  %v1799_v7 = vld [vmem:[%s2131_s5 + $0x8] sm:$0xff]   ;;  %v1800_v8 = vld [vmem:[%s2131_s5] sm:$0xff]  }
 0x134   : > { %1624 = vmatprep.subr.bf16.mxu1 %v1778_v26 }
 0x136   : > { %1593 = vmatpush3.bf16.msra.mxu0 %v1777_v25 }
 0x137   : > { %1625 = vmatpush3.bf16.msra.mxu1 %v1778_v26  ;;  %1594 = vmatprep.subr.bf16.mxu0 %v1779_v27 }
 0x138   : > { %1626 = vmatprep.subr.bf16.mxu1 %v1780_v30 }
 0x13a   : > { %1595 = vmatpush3.bf16.msra.mxu0 %v1779_v27 }
 0x13b   : > { %1627 = vmatpush3.bf16.msra.mxu1 %v1780_v30  ;;  %1596 = vmatprep.subr.bf16.mxu0 %v1781_v33 }
 0x13c   : > { %1628 = vmatprep.subr.bf16.mxu1 %v1782_v34 }
 0x13e   : > { %1597 = vmatpush3.bf16.msra.mxu0 %v1781_v33 }
 0x13f   : > { %1629 = vmatpush3.bf16.msra.mxu1 %v1782_v34  ;;  %1598 = vmatprep.subr.bf16.mxu0 %v1783_v35 }
 0x140   : > { %1630 = vmatprep.subr.bf16.mxu1 %v1784_v36 }
 0x142   : > { %1599 = vmatpush3.bf16.msra.mxu0 %v1783_v35 }
 0x143   : > { %1631 = vmatpush3.bf16.msra.mxu1 %v1784_v36  ;;  %1648 = vmatprep.subr.bf16.mxu0 %v1793_v42 }
 0x144   : > { %1696 = vmatprep.subr.bf16.mxu1 %v1793_v42 }
 0x145   : > { %1601 = vmatmul.mubr.bf16.vlgmr.msra.gmra.mxu0 %v733_v41 }
 0x146   : > { %1633 = vmatmul.mubr.bf16.vlgmr.msra.gmra.mxu1 %v1786_v43  ;;  %1604 = vmatprep.mubr.bf16.mxu0 %v734_v44 }
 0x147   : > { %1636 = vmatprep.mubr.bf16.mxu1 %v1787_v45  ;;  %1649 = vmatpush3.bf16.msra.mxu0 %v1793_v42 }
 0x148   : > { %1650 = vmatprep.subr.bf16.mxu0 %v1794_v47  ;;  %1704 = vmatpush3.bf16.msra.mxu1 %v1793_v42 }
 0x149   : > { %1697 = vmatprep.subr.bf16.mxu1 %v1794_v47 }
 0x14b   : > { %1651 = vmatpush3.bf16.msra.mxu0 %v1794_v47 }
 0x14c   : > { %1652 = vmatprep.subr.bf16.mxu0 %v1795_v51  ;;  %1705 = vmatpush3.bf16.msra.mxu1 %v1794_v47 }
 0x14d   : > { %1605 = vmatmul.mubr.bf16.gmra.mxu0 %v735_v52  ;;  %1698 = vmatprep.subr.bf16.mxu1 %v1795_v51 }
 0x14e   : > { %1637 = vmatmul.mubr.bf16.gmra.mxu1 %v1788_v53  ;;  %1608 = vmatprep.mubr.bf16.mxu0 %v736_v54 }
 0x14f   : > { %1640 = vmatprep.mubr.bf16.mxu1 %v1789_v55  ;;  %1653 = vmatpush3.bf16.msra.mxu0 %v1795_v51 }
 0x150   : > { %1654 = vmatprep.subr.bf16.mxu0 %v1796_v56  ;;  %1706 = vmatpush3.bf16.msra.mxu1 %v1795_v51 }
 0x151   : > { %1699 = vmatprep.subr.bf16.mxu1 %v1796_v56 }
 0x153   : > { %1655 = vmatpush3.bf16.msra.mxu0 %v1796_v56 }
 0x154   : > { %1656 = vmatprep.subr.bf16.mxu0 %v1797_v61  ;;  %1707 = vmatpush3.bf16.msra.mxu1 %v1796_v56 }
 0x155   : > { %1609 = vmatmul.mubr.bf16.gmra.mxu0 %v737_v62  ;;  %1700 = vmatprep.subr.bf16.mxu1 %v1797_v61 }
 0x156   : > { %1641 = vmatmul.mubr.bf16.gmra.mxu1 %v1790_v63  ;;  %1612 = vmatprep.mubr.bf16.mxu0 %v738_v0 }
 0x157   : > { %1644 = vmatprep.mubr.bf16.mxu1 %v1791_v1  ;;  %1657 = vmatpush3.bf16.msra.mxu0 %v1797_v61 }
 0x158   : > { %1708 = vmatpush3.bf16.msra.mxu1 %v1797_v61  ;;  %1658 = vmatprep.subr.bf16.mxu0 %v1798_v6 }
 0x159   : > { %1701 = vmatprep.subr.bf16.mxu1 %v1798_v6 }
 0x15b   : > { %1659 = vmatpush3.bf16.msra.mxu0 %v1798_v6 }
 0x15c   : > { %1709 = vmatpush3.bf16.msra.mxu1 %v1798_v6  ;;  %1660 = vmatprep.subr.bf16.mxu0 %v1799_v7 }
 0x15d   : > { %1613 = vmatmul.mubr.bf16.gmra.mxu0 %v739_v4  ;;  %1702 = vmatprep.subr.bf16.mxu1 %v1799_v7 }
 0x15e   : > { %1645 = vmatmul.mubr.bf16.gmra.mxu1 %v1792_v5 }
 0x15f   : > { %1661 = vmatpush3.bf16.msra.mxu0 %v1799_v7 }
 0x160   : > { %1710 = vmatpush3.bf16.msra.mxu1 %v1799_v7  ;;  %1662 = vmatprep.subr.bf16.mxu0 %v1800_v8 }
 0x161   : > { %1703 = vmatprep.subr.bf16.mxu1 %v1800_v8 }
 0x163   : > { %1663 = vmatpush3.bf16.msra.mxu0 %v1800_v8 }
 0x164   : > { %1711 = vmatpush3.bf16.msra.mxu1 %v1800_v8 }
 0x205   : > { %v1602_v9 = vpop.f32.mrf.mxu0 }
 0x206   : > { %v1634_v10 = vpop.f32.mrf.mxu1 }
 0x207   : > { %v870_v11 = vpop.f32.mrf.mxu0  ;;  %v1072_v18 = vadd.f32 %v1634_v10, %v1602_v9 }
 0x208   : > { %v1063_v12 = vpop.f32.mrf.mxu1 }
 0x209   : > { %v1603_v13 = vpop.f32.mrf.mxu0  ;;  %v1064_v15 = vadd.f32 %v1063_v12, %v870_v11  ;;  %v1128_v27 = vmax.f32 %v1072_v18, 0.0 }
 0x20a   : > { %v1635_v14 = vpop.f32.mrf.mxu1 }
 0x20b   : > { %v1075_v16 = vadd.f32 %v1635_v14, %v1603_v13  ;;  %v873_v17 = vpop.f32.mrf.mxu0  ;;  %v1126_v24 = vmax.f32 %v1064_v15, 0.0 }
 0x20c   : > { %v1066_v19 = vpop.f32.mrf.mxu1 }
 0x20d   : > { %v1067_v20 = vadd.f32 %v1066_v19, %v873_v17  ;;  %v1606_v21 = vpop.f32.mrf.mxu0  ;;  %v1129_v22 = vmax.f32 %v1075_v16, 0.0 }
 0x20e   : > { %v1638_v23 = vpop.f32.mrf.mxu1 }
 0x20f   : > { %v1127_v25 = vmax.f32 %v1067_v20, 0.0  ;;  %v886_v26 = vpop.f32.mrf.mxu0  ;;  %v1143_v31 = vpack.c.bf16 %v1129_v22, %v1128_v27  ;;  %v1088_v36 = vadd.f32 %v1638_v23, %v1606_v21 }
 0x210   : > { %v1079_v28 = vpop.f32.mrf.mxu1 }
 0x211   : > { %v1142_v29 = vpack.c.bf16 %v1127_v25, %v1126_v24  ;;  %v1607_v30 = vpop.f32.mrf.mxu0  ;;  %v1080_v33 = vadd.f32 %v1079_v28, %v886_v26  ;;  %v1132_v45 = vmax.f32 %v1088_v36, 0.0 }
 0x212   : > { %v1639_v32 = vpop.f32.mrf.mxu1 }
 0x213   : > { %v1091_v34 = vadd.f32 %v1639_v32, %v1607_v30  ;;  %1664 = vmatprep.mubr.bf16.mxu0 %v1142_v29  ;;  %v889_v35 = vpop.f32.mrf.mxu0  ;;  %v1130_v42 = vmax.f32 %v1080_v33, 0.0 }
 0x214   : > { %v1082_v37 = vpop.f32.mrf.mxu1  ;;  %1665 = vmatmul.mubr.bf16.vlgmr.msra.gmra.mxu0 %v1143_v31 }
 0x215   : > { %v1083_v38 = vadd.f32 %v1082_v37, %v889_v35  ;;  %v1610_v39 = vpop.f32.mrf.mxu0  ;;  %v1133_v40 = vmax.f32 %v1091_v34, 0.0 }
 0x216   : > { %v1642_v41 = vpop.f32.mrf.mxu1 }
 0x217   : > { %v1131_v43 = vmax.f32 %v1083_v38, 0.0  ;;  %v902_v44 = vpop.f32.mrf.mxu0  ;;  %v1145_v49 = vpack.c.bf16 %v1133_v40, %v1132_v45  ;;  %v1104_v54 = vadd.f32 %v1642_v41, %v1610_v39 }
 0x218   : > { %v1095_v46 = vpop.f32.mrf.mxu1 }
 0x219   : > { %v1144_v47 = vpack.c.bf16 %v1131_v43, %v1130_v42  ;;  %v1611_v48 = vpop.f32.mrf.mxu0  ;;  %v1096_v51 = vadd.f32 %v1095_v46, %v902_v44  ;;  %v1136_v63 = vmax.f32 %v1104_v54, 0.0 }
 0x21a   : > { %v1643_v50 = vpop.f32.mrf.mxu1 }
 0x21b   : > { %v1107_v52 = vadd.f32 %v1643_v50, %v1611_v48  ;;  %1668 = vmatprep.mubr.bf16.mxu0 %v1144_v47  ;;  %v905_v53 = vpop.f32.mrf.mxu0  ;;  %v1134_v60 = vmax.f32 %v1096_v51, 0.0 }
 0x21c   : > { %v1098_v55 = vpop.f32.mrf.mxu1  ;;  %1669 = vmatmul.mubr.bf16.gmra.mxu0 %v1145_v49 }
 0x21d   : > { %v1099_v56 = vadd.f32 %v1098_v55, %v905_v53  ;;  %v1614_v57 = vpop.f32.mrf.mxu0  ;;  %v1137_v58 = vmax.f32 %v1107_v52, 0.0 }
 0x21e   : > { %v1646_v59 = vpop.f32.mrf.mxu1 }
 0x21f   : > { %v1135_v61 = vmax.f32 %v1099_v56, 0.0  ;;  %v918_v62 = vpop.f32.mrf.mxu0  ;;  %v1147_v3 = vpack.c.bf16 %v1137_v58, %v1136_v63  ;;  %v1120_v8 = vadd.f32 %v1646_v59, %v1614_v57 }
 0x220   : > { %v1111_v0 = vpop.f32.mrf.mxu1 }
 0x221   : > { %v1146_v1 = vpack.c.bf16 %v1135_v61, %v1134_v60  ;;  %v1615_v2 = vpop.f32.mrf.mxu0  ;;  %v1112_v5 = vadd.f32 %v1111_v0, %v918_v62  ;;  %v1140_v14 = vmax.f32 %v1120_v8, 0.0 }
 0x222   : > { %v1647_v4 = vpop.f32.mrf.mxu1 }
 0x223   : > { %v1123_v6 = vadd.f32 %v1647_v4, %v1615_v2  ;;  %1672 = vmatprep.mubr.bf16.mxu1 %v1146_v1  ;;  %v921_v7 = vpop.f32.mrf.mxu0  ;;  %v1138_v12 = vmax.f32 %v1112_v5, 0.0 }
 0x224   : > { %v1114_v9 = vpop.f32.mrf.mxu1  ;;  %1673 = vmatmul.mubr.bf16.vlgmr.msra.gmra.mxu1 %v1147_v3 }
 0x225   : > { %v1115_v10 = vadd.f32 %v1114_v9, %v921_v7  ;;  %v1141_v11 = vmax.f32 %v1123_v6, 0.0 }
 0x227   : > { %v1139_v13 = vmax.f32 %v1115_v10, 0.0  ;;  %v1149_v16 = vpack.c.bf16 %v1141_v11, %v1140_v14 }
 0x229   : > { %v1148_v15 = vpack.c.bf16 %v1139_v13, %v1138_v12 }
 0x22b   : > { %1676 = vmatprep.mubr.bf16.mxu1 %v1148_v15 }
 0x22c   : > { %1677 = vmatmul.mubr.bf16.gmra.mxu1 %v1149_v16 }
 0x2d4   : > { %v1666_v17 = vpop.f32.mrf.mxu0 }
 0x2d5   : > { %1313 = vst [vmem:[%s2132_s6 + $0x10] sm:$0xff] %v1666_v17 }
 0x2d6   : > { %v1248_v18 = vpop.f32.mrf.mxu0 }
 0x2d7   : > { %1311 = vst [vmem:[%s2132_s6] sm:$0xff] %v1248_v18 }
 0x2d8   : > { %v1667_v19 = vpop.f32.mrf.mxu0 }
 0x2d9   : > { %1314 = vst [vmem:[%s2132_s6 + $0x18] sm:$0xff] %v1667_v19 }
 0x2da   : > { %v1251_v20 = vpop.f32.mrf.mxu0 }
 0x2db   : > { %1312 = vst [vmem:[%s2132_s6 + $0x8] sm:$0xff] %v1251_v20 }
 0x2dc   : > { %v1670_v21 = vpop.f32.mrf.mxu0 }
 0x2dd   : > { %1317 = vst [vmem:[%s2132_s6 + $0x30] sm:$0xff] %v1670_v21 }
 0x2de   : > { %v1264_v22 = vpop.f32.mrf.mxu0 }
 0x2df   : > { %1315 = vst [vmem:[%s2132_s6 + $0x20] sm:$0xff] %v1264_v22 }
 0x2e0   : > { %v1671_v23 = vpop.f32.mrf.mxu0 }
 0x2e1   : > { %1318 = vst [vmem:[%s2132_s6 + $0x38] sm:$0xff] %v1671_v23 }
 0x2e2   : > { %v1267_v24 = vpop.f32.mrf.mxu0 }
 0x2e3   : > { %1316 = vst [vmem:[%s2132_s6 + $0x28] sm:$0xff] %v1267_v24 }
 0x2e4   : > { %v1674_v25 = vpop.f32.mrf.mxu1 }
 0x2e5   : > { %1321 = vst [vmem:[%s2132_s6 + $0x50] sm:$0xff] %v1674_v25 }
 0x2e6   : > { %v1280_v26 = vpop.f32.mrf.mxu1 }
 0x2e7   : > { %1319 = vst [vmem:[%s2132_s6 + $0x40] sm:$0xff] %v1280_v26 }
 0x2e8   : > { %v1675_v27 = vpop.f32.mrf.mxu1 }
 0x2e9   : > { %1322 = vst [vmem:[%s2132_s6 + $0x58] sm:$0xff] %v1675_v27 }
 0x2ea   : > { %v1283_v28 = vpop.f32.mrf.mxu1 }
 0x2eb   : > { %1320 = vst [vmem:[%s2132_s6 + $0x48] sm:$0xff] %v1283_v28 }
 0x2ec   : > { %v1678_v29 = vpop.f32.mrf.mxu1 }
 0x2ed   : > { %1325 = vst [vmem:[%s2132_s6 + $0x70] sm:$0xff] %v1678_v29 }
 0x2ee   : > { %v1296_v30 = vpop.f32.mrf.mxu1 }
 0x2ef   : > { %1323 = vst [vmem:[%s2132_s6 + $0x60] sm:$0xff] %v1296_v30 }
 0x2f0   : > { %v1679_v31 = vpop.f32.mrf.mxu1 }
 0x2f1   : > { %1326 = vst [vmem:[%s2132_s6 + $0x78] sm:$0xff] %v1679_v31 }
 0x2f2   : > { %v1299_v32 = vpop.f32.mrf.mxu1 }
 0x2f3   : > { %1324 = vst [vmem:[%s2132_s6 + $0x68] sm:$0xff] %v1299_v32 }
 0x2f4 PF: > { %s16_s25 = sadd.s32 1, %s1839_s25   ;;  %s2133_s21 = smov %s1827_s22 }
 0x2f5   : > { %p13_p12 = scmp.ge.s32.totalorder %s16_s25, 7   ;;  %s2134_s22 = smov %s1912_s29 }
 0x2f6   : > { %s2135_s23 = smov %s1835_s24  ;;  %s2136_s24 = smov %s2138_s26 }
 0x2f7   :  { %15 = sbr.rel (!%p13_p12) target bundleno = 3 (0x3), region = 134 }

</bundles_post_ra>
